<compile_context>
chip_gen: v6e
topology: v6e:2x2x1
jax: 0.10.0
libtpu: 0.0.40
codegen_flags: <defaults>
</compile_context>

<pallas_src>
import jax
import jax.numpy as jnp
from jax.experimental import pallas as pl
from jax.experimental.pallas import tpu as pltpu


def _make_kernel(C, E):
    """Kernel over one [TM, C] row tile -> [TM, C*E] basis tile."""

    def kernel(x_ref, o_ref):
        x = x_ref[...].astype(jnp.float32)          # [TM, C], upcast on VPU
        cols = []
        for c in range(C):                          # C, E are small & static
            base = x[:, c:c + 1]                    # [TM, 1]
            p = jnp.ones_like(base)                 # exponent 0 -> 1 (0**0 == 1)
            cols.append(p)
            for _ in range(1, E):
                p = p * base                        # running product: exact int powers
                cols.append(p)
        # (c, e) channel-major order matches torch's reshape of [..., C, E];
        # assemble the whole tile once and do a single store.
        o_ref[...] = jnp.concatenate(cols, axis=-1).astype(o_ref.dtype)

    return kernel


def _choose_tile_rows(M, max_tile_rows, min_grid):
    """Big tiles to amortize per-step overhead, but >= min_grid steps so the
    'parallel' grid axis can shard across both TensorCores on v7x."""
    if M <= 8 * min_grid:
        return M                                    # tiny: one full block
    tm = min(max_tile_rows, pl.cdiv(M, min_grid))
    return max(8, (tm // 8) * 8)                    # multiple of 8 sublanes


def cosine_basis_pallas(cos_ij, max_exp, *, max_tile_rows=8192, min_grid=2):
    B, A, N, C = cos_ij.shape
    E = max_exp + 1
    M = B * A * N
    dtype = cos_ij.dtype
    itemsize = jnp.dtype(dtype).itemsize

    # Free, contiguous reshape; native dtype is passed straight to the kernel.
    x2 = cos_ij.reshape(M, C)

    TM = _choose_tile_rows(M, max_tile_rows, min_grid)
    grid = (pl.cdiv(M, TM),)

    # Conservative padded-VMEM budget: [TM, C] and [TM, C*E] blocks each occupy
    # [TM, 128]-lane tiles, double-buffered -> ~2 KiB/row at f32.  Clamp the
    # scoped-VMEM request to 48 MiB so it stays under v7x's 64 MiB physical.
    working_set = TM * 2 * 2 * 128 * 4
    vmem_limit = int(min(max(32 << 20, working_set + (8 << 20)), 48 << 20))

    out2 = pl.pallas_call(
        _make_kernel(C, E),
        out_shape=jax.ShapeDtypeStruct((M, C * E), dtype),
        grid=grid,
        in_specs=[pl.BlockSpec((TM, C), lambda i: (i, 0))],
        out_specs=pl.BlockSpec((TM, C * E), lambda i: (i, 0)),
        compiler_params=pltpu.CompilerParams(
            dimension_semantics=("parallel",),
            vmem_limit_bytes=vmem_limit),
        cost_estimate=pl.CostEstimate(
            flops=M * C * max(E - 1, 0),
            transcendentals=0,
            bytes_accessed=M * C * itemsize + M * C * E * itemsize),
    )(x2)

    # Free reshape back: [M, C*E] -> [B, A, N, C*E].
    return out2.reshape(B, A, N, C * E)


def cosine_basis_ref(cos_ij, max_exp):
    """Pure-JAX reference mirroring the torch forward.

    Integer powers built via cumprod so negative bases and 0**0 behave exactly
    like torch's `x ** float_integer_exponent`."""
    E = max_exp + 1
    c = cos_ij[..., None].astype(jnp.float32)                          # [B,A,N,C,1]
    stack = jnp.concatenate([jnp.ones_like(c)] + [c] * (E - 1), -1)    # [B,A,N,C,E]
    basis = jnp.cumprod(stack, axis=-1)                                # c ** [0..E-1]
    return basis.reshape(cos_ij.shape[:3] + (-1,)).astype(cos_ij.dtype)


if __name__ == "__main__":
    B, A, N, C = 2, 8, 8, 3        # batch, atoms, neighbors, direction cosines
    max_exp = 3                    # E = 4 exponents -> output width C*E = 12

    key = jax.random.PRNGKey(0)
    cos_ij = jax.random.uniform(key, (B, A, N, C), jnp.float32, -1.0, 1.0)

    out = cosine_basis_pallas(cos_ij, max_exp)     # M=128 -> grid of 2 row tiles
    out = jax.block_until_ready(out)

    ref = cosine_basis_ref(cos_ij, max_exp)
    assert out.shape == (B, A, N, C * (max_exp + 1))
    assert jnp.allclose(out, ref, atol=1e-6, rtol=1e-6), "mismatch vs reference"

    print("KERNEL_OK")
</pallas_src>

<mosaic_0001>
module attributes {stable_mosaic.version = 11 : i64} {
  func.func @kernel(%arg0: i32, %arg1: memref<64x3xf32, #tpu.memory_space<vmem>>, %arg2: memref<64x12xf32, #tpu.memory_space<vmem>>) attributes {dimension_semantics = [#tpu.dimension_semantics<parallel>], iteration_bounds = array<i64: 2>, scalar_prefetch = 0 : i64, scratch_operands = 0 : i64, tpu.core_type = #tpu.core_type<tc>, window_params = [{transform_indices = @transform_0, window_bounds = array<i64: 64, 3>}, {transform_indices = @transform_1, window_bounds = array<i64: 64, 12>}]} {
    %c0 = arith.constant 0 : index
    %c0_0 = arith.constant 0 : index
    %0 = vector.load %arg1[%c0, %c0_0] : memref<64x3xf32, #tpu.memory_space<vmem>>, vector<64x3xf32>
    %1 = vector.extract_strided_slice %0 {offsets = [0, 0], sizes = [64, 1], strides = [1, 1]} : vector<64x3xf32> to vector<64x1xf32>
    %cst = arith.constant 1.000000e+00 : f32
    %2 = vector.broadcast %cst : f32 to vector<64x1xf32>
    %3 = arith.mulf %2, %1 : vector<64x1xf32>
    %4 = arith.mulf %3, %1 : vector<64x1xf32>
    %5 = arith.mulf %4, %1 : vector<64x1xf32>
    %6 = vector.extract_strided_slice %0 {offsets = [0, 1], sizes = [64, 1], strides = [1, 1]} : vector<64x3xf32> to vector<64x1xf32>
    %cst_1 = arith.constant 1.000000e+00 : f32
    %7 = vector.broadcast %cst_1 : f32 to vector<64x1xf32>
    %8 = arith.mulf %7, %6 : vector<64x1xf32>
    %9 = arith.mulf %8, %6 : vector<64x1xf32>
    %10 = arith.mulf %9, %6 : vector<64x1xf32>
    %11 = vector.extract_strided_slice %0 {offsets = [0, 2], sizes = [64, 1], strides = [1, 1]} : vector<64x3xf32> to vector<64x1xf32>
    %cst_2 = arith.constant 1.000000e+00 : f32
    %12 = vector.broadcast %cst_2 : f32 to vector<64x1xf32>
    %13 = arith.mulf %12, %11 : vector<64x1xf32>
    %14 = arith.mulf %13, %11 : vector<64x1xf32>
    %15 = arith.mulf %14, %11 : vector<64x1xf32>
    %16 = tpu.concatenate %2, %3, %4, %5, %7, %8, %9, %10, %12, %13, %14, %15 in 1 : vector<64x1xf32>, vector<64x1xf32>, vector<64x1xf32>, vector<64x1xf32>, vector<64x1xf32>, vector<64x1xf32>, vector<64x1xf32>, vector<64x1xf32>, vector<64x1xf32>, vector<64x1xf32>, vector<64x1xf32>, vector<64x1xf32> -> vector<64x12xf32>
    %c0_3 = arith.constant 0 : index
    %c0_4 = arith.constant 0 : index
    %17 = vector.load %arg2[%c0_3, %c0_4] : memref<64x12xf32, #tpu.memory_space<vmem>>, vector<64x12xf32>
    tpu.vector_store %arg2[%c0_3, %c0_4], %16 {strides = array<i32>} : memref<64x12xf32, #tpu.memory_space<vmem>>, vector<64x12xf32>,
    return
  }
  func.func @transform_0(%arg0: i32) -> (i32, i32) {
    %c0_i32 = arith.constant 0 : i32
    %c0_i32_0 = arith.constant 0 : i32
    return %arg0, %c0_i32 : i32, i32
  }
  func.func @transform_1(%arg0: i32) -> (i32, i32) {
    %c0_i32 = arith.constant 0 : i32
    %c0_i32_0 = arith.constant 0 : i32
    return %arg0, %c0_i32 : i32, i32
  }
}

</mosaic_0001>

<bundles_post_ra>
// kernel: tpu_custom_call.1
= control target key start
LH: loop header
LB: loop body
LE: loop exit
PB: predicated region body
PF: predicated region fallthrough
CT: control target
= control target key end

     0   :  { %s603_s6 = smov 0   ;;  %s921_s0 = inlined_call_operand.vmem [shape: f32[128,3], index: 0, kind: input, shape index: {}]   ;;  %s922_s1 = inlined_call_operand.vmem [shape: f32[128,12], index: 1, kind: output, shape index: {}]  }
   0x1 LB: > { %s548_s7 = sadd.s32 4294967295, %s582_s6   ;;  %p552_p0 = scmp.ge.s32.totalorder %s582_s6, 1  ;;  %s582_s6 = sphi %s603_s6, %s11_s6  }
   0x2   : > { %p88_p1 = scmp.lt.s32.totalorder %s582_s6, 3 }
   0x4   : > { %p89_p2 = pnand %p552_p0, %p88_p1 }
   0x5   : > { %s553_s8 = sshll.u32 (!%p89_p2), %s548_s7, 3  ;;  %s584_s13 = smov (!%p89_p2), 1  }
   0x6   : > { %92 = sbr.rel (%p89_p2) target bundleno = 272 (0x110), region = 24  ;;  %p109_p3 = scmp.lt.s32.totalorder (!%p89_p2), %s553_s8, 15 }
   0x7   : > { %s585_s14 = smov (!%p89_p2), 2   ;;  %s586_s15 = smov (!%p89_p2), 3  }
   0x8   : > { %s587_s16 = smov (!%p89_p2), 4   ;;  %s588_s17 = smov (!%p89_p2), 5  }
   0x9   : > { %s589_s18 = smov (!%p89_p2), 6   ;;  %s590_s19 = smov (!%p89_p2), 7  }
   0xa   : > { %s591_s20 = smov (!%p89_p2), 8   ;;  %s592_s21 = smov (!%p89_p2), 9  }
   0xb   : > { %s924_s8 = smov (!%p109_p3, %s553_s8), 15  ;;  %vm384_vm0 = vcmask 7168   ;;  %vm393_vm1 = vcmask 15360   ;;  %vm402_vm2 = vcmask 23552   ;;  %vm411_vm3 = vcmask 31744  }
   0xc   : > { %s554_s9 = sshll.u32 %s924_s8, 3  ;;  %vm420_vm4 = vcmask 39936   ;;  %vm429_vm5 = vcmask 48128   ;;  %vm438_vm6 = vcmask 56320   ;;  %vm447_vm7 = vcmask 64512  }
   0xd   : > { %s112_s12 = scalar_lea.vmem %s921_s0, %s554_s9  ;;  %vm456_vm8 = vcmask 72704   ;;  %vm465_vm9 = vcmask 80896   ;;  %vm474_vm10 = vcmask 89088   ;;  %vm483_vm11 = vcmask 97280   ;;  %s852_s24 = scalar_lea.vmem %s922_s1, %s554_s9 }
   0xe   : > { %v619_v0 = vld [vmem:[%s112_s12 + $0x10] sm:$0xff]  ;;  %v621_v1 = vld [vmem:[%s112_s12] sm:$0xff]  ;;  %v625_v2 = vld [vmem:[%s112_s12 + $0x18] sm:$0xff] }
   0xf   : > { %156 = vrot.lane.b32.xlu1 %v619_v0, %s584_s13  ;;  %152 = vrot.lane.b32.xlu0 %v621_v1, %s584_s13  ;;  %v627_v3 = vld [vmem:[%s112_s12 + $0x8] sm:$0xff]  ;;  %v633_v5 = vld [vmem:[%s112_s12 + $0x20] sm:$0xff]  ;;  %v649_v9 = vmul.f32 %v621_v1, %v621_v1  ;;  %v655_v10 = vmul.f32 %v625_v2, %v625_v2  ;;  %v659_v11 = vmul.f32 %v619_v0, %v619_v0 }
  0x10   : > { %v631_v4 = vld [vmem:[%s112_s12 + $0x28] sm:$0xff]  ;;  %v637_v6 = vld [vmem:[%s112_s12 + $0x38] sm:$0xff]  ;;  %v639_v7 = vld [vmem:[%s112_s12 + $0x30] sm:$0xff]  ;;  %v645_v8 = vmul.f32 %v627_v3, %v627_v3  ;;  %v669_v13 = vmul.f32 %v633_v5, %v633_v5 }
  0x11   : > { %v665_v12 = vmul.f32 %v631_v4, %v631_v4  ;;  %v675_v14 = vmul.f32 %v637_v6, %v637_v6  ;;  %v679_v15 = vmul.f32 %v639_v7, %v639_v7  ;;  %v689_v17 = vmul.f32 %v649_v9, %v621_v1 }
  0x12   : > { %v685_v16 = vmul.f32 %v645_v8, %v627_v3  ;;  %v695_v18 = vmul.f32 %v655_v10, %v625_v2  ;;  %v699_v19 = vmul.f32 %v659_v11, %v619_v0  ;;  %v709_v21 = vmul.f32 %v669_v13, %v633_v5 }
  0x13   : > { %158 = vrot.lane.b32.xlu1 %v625_v2, %s584_s13  ;;  %154 = vrot.lane.b32.xlu0 %v627_v3, %s584_s13  ;;  %v705_v20 = vmul.f32 %v665_v12, %v631_v4  ;;  %v715_v22 = vmul.f32 %v675_v14, %v637_v6  ;;  %v719_v23 = vmul.f32 %v679_v15, %v639_v7 }
  0x17   : > { %162 = vrot.lane.b32.xlu1 %v631_v4, %s584_s13  ;;  %160 = vrot.lane.b32.xlu0 %v633_v5, %s584_s13 }
  0x1b   : > { %166 = vrot.lane.b32.xlu1 %v637_v6, %s584_s13  ;;  %164 = vrot.lane.b32.xlu0 %v639_v7, %s584_s13 }
  0x1f   : > { %186 = vrot.lane.b32.xlu1 %v645_v8, %s585_s14  ;;  %184 = vrot.lane.b32.xlu0 %v649_v9, %s585_s14 }
  0x23   : > { %190 = vrot.lane.b32.xlu1 %v655_v10, %s585_s14  ;;  %188 = vrot.lane.b32.xlu0 %v659_v11, %s585_s14 }
  0x27   : > { %194 = vrot.lane.b32.xlu1 %v665_v12, %s585_s14  ;;  %192 = vrot.lane.b32.xlu0 %v669_v13, %s585_s14 }
  0x2b   : > { %198 = vrot.lane.b32.xlu1 %v675_v14, %s585_s14  ;;  %196 = vrot.lane.b32.xlu0 %v679_v15, %s585_s14 }
  0x2f   : > { %218 = vrot.lane.b32.xlu1 %v685_v16, %s586_s15  ;;  %216 = vrot.lane.b32.xlu0 %v689_v17, %s586_s15 }
  0x33   : > { %222 = vrot.lane.b32.xlu1 %v695_v18, %s586_s15  ;;  %220 = vrot.lane.b32.xlu0 %v699_v19, %s586_s15 }
  0x37   : > { %226 = vrot.lane.b32.xlu1 %v705_v20, %s586_s15  ;;  %224 = vrot.lane.b32.xlu0 %v709_v21, %s586_s15 }
  0x3b   : > { %230 = vrot.lane.b32.xlu1 %v715_v22, %s586_s15  ;;  %228 = vrot.lane.b32.xlu0 %v719_v23, %s586_s15 }
  0x3f   : > { %242 = vrot.lane.b32.xlu1 %v627_v3, %s587_s16  ;;  %240 = vrot.lane.b32.xlu0 %v621_v1, %s587_s16 }
  0x43   : > { %246 = vrot.lane.b32.xlu1 %v625_v2, %s587_s16  ;;  %244 = vrot.lane.b32.xlu0 %v619_v0, %s587_s16 }
  0x47   : > { %250 = vrot.lane.b32.xlu1 %v631_v4, %s587_s16  ;;  %248 = vrot.lane.b32.xlu0 %v633_v5, %s587_s16 }
  0x4b   : > { %254 = vrot.lane.b32.xlu1 %v637_v6, %s587_s16  ;;  %252 = vrot.lane.b32.xlu0 %v639_v7, %s587_s16 }
  0x4f   : > { %266 = vrot.lane.b32.xlu1 %v645_v8, %s588_s17  ;;  %264 = vrot.lane.b32.xlu0 %v649_v9, %s588_s17 }
  0x53   : > { %270 = vrot.lane.b32.xlu1 %v655_v10, %s588_s17  ;;  %268 = vrot.lane.b32.xlu0 %v659_v11, %s588_s17 }
  0x57   : > { %274 = vrot.lane.b32.xlu1 %v665_v12, %s588_s17  ;;  %272 = vrot.lane.b32.xlu0 %v669_v13, %s588_s17 }
  0x5b   : > { %278 = vrot.lane.b32.xlu1 %v675_v14, %s588_s17  ;;  %276 = vrot.lane.b32.xlu0 %v679_v15, %s588_s17 }
  0x5f   : > { %290 = vrot.lane.b32.xlu1 %v685_v16, %s589_s18  ;;  %288 = vrot.lane.b32.xlu0 %v689_v17, %s589_s18 }
  0x63   : > { %294 = vrot.lane.b32.xlu1 %v695_v18, %s589_s18  ;;  %292 = vrot.lane.b32.xlu0 %v699_v19, %s589_s18 }
  0x67   : > { %298 = vrot.lane.b32.xlu1 %v705_v20, %s589_s18  ;;  %296 = vrot.lane.b32.xlu0 %v709_v21, %s589_s18 }
  0x6b   : > { %302 = vrot.lane.b32.xlu1 %v715_v22, %s589_s18  ;;  %300 = vrot.lane.b32.xlu0 %v719_v23, %s589_s18 }
  0x6f   : > { %314 = vrot.lane.b32.xlu1 %v627_v3, %s590_s19  ;;  %312 = vrot.lane.b32.xlu0 %v621_v1, %s590_s19 }
  0x73   : > { %318 = vrot.lane.b32.xlu1 %v625_v2, %s590_s19  ;;  %316 = vrot.lane.b32.xlu0 %v619_v0, %s590_s19 }
  0x77   : > { %322 = vrot.lane.b32.xlu1 %v631_v4, %s590_s19  ;;  %320 = vrot.lane.b32.xlu0 %v633_v5, %s590_s19 }
  0x7b   : > { %326 = vrot.lane.b32.xlu1 %v637_v6, %s590_s19  ;;  %324 = vrot.lane.b32.xlu0 %v639_v7, %s590_s19 }
  0x7f   : > { %338 = vrot.lane.b32.xlu1 %v645_v8, %s591_s20  ;;  %336 = vrot.lane.b32.xlu0 %v649_v9, %s591_s20 }
  0x81   : > { %v157_v24 = vpop.permute.xlu1 %156  ;;  %v153_v25 = vpop.permute.xlu0 %152 }
  0x82   : > { %v385_v32 = vsel %vm384_vm0, 1.0, %v153_v25  ;;  %v387_v38 = vsel %vm384_vm0, 1.0, %v157_v24 }
  0x83   : > { %342 = vrot.lane.b32.xlu1 %v655_v10, %s591_s20  ;;  %340 = vrot.lane.b32.xlu0 %v659_v11, %s591_s20 }
  0x85   : > { %v159_v26 = vpop.permute.xlu1 %158  ;;  %v155_v27 = vpop.permute.xlu0 %154 }
  0x86   : > { %v386_v33 = vsel %vm384_vm0, 1.0, %v155_v27  ;;  %v388_v39 = vsel %vm384_vm0, 1.0, %v159_v26 }
  0x87   : > { %346 = vrot.lane.b32.xlu1 %v665_v12, %s591_s20  ;;  %344 = vrot.lane.b32.xlu0 %v669_v13, %s591_s20 }
  0x89   : > { %v163_v28 = vpop.permute.xlu1 %162  ;;  %v161_v29 = vpop.permute.xlu0 %160 }
  0x8a   : > { %v390_v44 = vsel %vm384_vm0, 1.0, %v163_v28  ;;  %v389_v45 = vsel %vm384_vm0, 1.0, %v161_v29 }
  0x8b   : > { %350 = vrot.lane.b32.xlu1 %v675_v14, %s591_s20  ;;  %348 = vrot.lane.b32.xlu0 %v679_v15, %s591_s20 }
  0x8d   : > { %v167_v30 = vpop.permute.xlu1 %166  ;;  %v165_v31 = vpop.permute.xlu0 %164 }
  0x8e   : > { %v392_v50 = vsel %vm384_vm0, 1.0, %v167_v30  ;;  %v391_v51 = vsel %vm384_vm0, 1.0, %v165_v31 }
  0x8f   : > { %362 = vrot.lane.b32.xlu1 %v685_v16, %s592_s21  ;;  %360 = vrot.lane.b32.xlu0 %v689_v17, %s592_s21 }
  0x91   : > { %v187_v34 = vpop.permute.xlu1 %186  ;;  %v185_v35 = vpop.permute.xlu0 %184 }
  0x92   : > { %v395_v36 = vsel %vm393_vm1, %v386_v33, %v187_v34  ;;  %v394_v37 = vsel %vm393_vm1, %v385_v32, %v185_v35 }
  0x93   : > { %366 = vrot.lane.b32.xlu1 %v695_v18, %s592_s21  ;;  %364 = vrot.lane.b32.xlu0 %v699_v19, %s592_s21 }
  0x95   : > { %v191_v40 = vpop.permute.xlu1 %190  ;;  %v189_v41 = vpop.permute.xlu0 %188 }
  0x96   : > { %v397_v42 = vsel %vm393_vm1, %v388_v39, %v191_v40  ;;  %v396_v43 = vsel %vm393_vm1, %v387_v38, %v189_v41 }
  0x97   : > { %370 = vrot.lane.b32.xlu1 %v705_v20, %s592_s21  ;;  %368 = vrot.lane.b32.xlu0 %v709_v21, %s592_s21 }
  0x99   : > { %v195_v46 = vpop.permute.xlu1 %194  ;;  %v193_v47 = vpop.permute.xlu0 %192 }
  0x9a   : > { %v399_v48 = vsel %vm393_vm1, %v390_v44, %v195_v46  ;;  %v398_v49 = vsel %vm393_vm1, %v389_v45, %v193_v47 }
  0x9b   : > { %374 = vrot.lane.b32.xlu1 %v715_v22, %s592_s21  ;;  %372 = vrot.lane.b32.xlu0 %v719_v23, %s592_s21 }
  0x9d   : > { %v199_v52 = vpop.permute.xlu1 %198  ;;  %v197_v53 = vpop.permute.xlu0 %196 }
  0x9e   : > { %v401_v54 = vsel %vm393_vm1, %v392_v50, %v199_v52  ;;  %v400_v55 = vsel %vm393_vm1, %v391_v51, %v197_v53 }
  0xa1   : > { %v219_v56 = vpop.permute.xlu1 %218  ;;  %v217_v57 = vpop.permute.xlu0 %216 }
  0xa2   : > { %v404_v58 = vsel %vm402_vm2, %v395_v36, %v219_v56  ;;  %v403_v59 = vsel %vm402_vm2, %v394_v37, %v217_v57 }
  0xa3   : > { %v413_v8 = vsel %vm411_vm3, %v404_v58, 1.0  ;;  %v412_v9 = vsel %vm411_vm3, %v403_v59, 1.0 }
  0xa5   : > { %v223_v60 = vpop.permute.xlu1 %222  ;;  %v221_v61 = vpop.permute.xlu0 %220 }
  0xa6   : > { %v406_v62 = vsel %vm402_vm2, %v397_v42, %v223_v60  ;;  %v405_v63 = vsel %vm402_vm2, %v396_v43, %v221_v61 }
  0xa7   : > { %v415_v14 = vsel %vm411_vm3, %v406_v62, 1.0  ;;  %v414_v15 = vsel %vm411_vm3, %v405_v63, 1.0 }
  0xa9   : > { %v227_v0 = vpop.permute.xlu1 %226  ;;  %v225_v1 = vpop.permute.xlu0 %224 }
  0xaa   : > { %v408_v2 = vsel %vm402_vm2, %v399_v48, %v227_v0  ;;  %v407_v3 = vsel %vm402_vm2, %v398_v49, %v225_v1 }
  0xab   : > { %v417_v20 = vsel %vm411_vm3, %v408_v2, 1.0  ;;  %v416_v21 = vsel %vm411_vm3, %v407_v3, 1.0 }
  0xad   : > { %v231_v4 = vpop.permute.xlu1 %230  ;;  %v229_v5 = vpop.permute.xlu0 %228 }
  0xae   : > { %v410_v6 = vsel %vm402_vm2, %v401_v54, %v231_v4  ;;  %v409_v7 = vsel %vm402_vm2, %v400_v55, %v229_v5 }
  0xaf   : > { %v419_v26 = vsel %vm411_vm3, %v410_v6, 1.0  ;;  %v418_v27 = vsel %vm411_vm3, %v409_v7, 1.0 }
  0xb1   : > { %v243_v10 = vpop.permute.xlu1 %242  ;;  %v241_v11 = vpop.permute.xlu0 %240 }
  0xb2   : > { %v422_v12 = vsel %vm420_vm4, %v413_v8, %v243_v10  ;;  %v421_v13 = vsel %vm420_vm4, %v412_v9, %v241_v11 }
  0xb5   : > { %v247_v16 = vpop.permute.xlu1 %246  ;;  %v245_v17 = vpop.permute.xlu0 %244 }
  0xb6   : > { %v424_v18 = vsel %vm420_vm4, %v415_v14, %v247_v16  ;;  %v423_v19 = vsel %vm420_vm4, %v414_v15, %v245_v17 }
  0xb9   : > { %v251_v22 = vpop.permute.xlu1 %250  ;;  %v249_v23 = vpop.permute.xlu0 %248 }
  0xba   : > { %v806_v24 = vsel %vm420_vm4, %v417_v20, %v251_v22  ;;  %v809_v25 = vsel %vm420_vm4, %v416_v21, %v249_v23 }
  0xbd   : > { %v255_v28 = vpop.permute.xlu1 %254  ;;  %v253_v29 = vpop.permute.xlu0 %252 }
  0xbe   : > { %v814_v30 = vsel %vm420_vm4, %v419_v26, %v255_v28  ;;  %v817_v31 = vsel %vm420_vm4, %v418_v27, %v253_v29 }
  0xc1   : > { %v267_v32 = vpop.permute.xlu1 %266  ;;  %v265_v33 = vpop.permute.xlu0 %264 }
  0xc2   : > { %v431_v62 = vsel %vm429_vm5, %v422_v12, %v267_v32  ;;  %v430_v63 = vsel %vm429_vm5, %v421_v13, %v265_v33 }
  0xc5   : > { %v271_v34 = vpop.permute.xlu1 %270  ;;  %v269_v35 = vpop.permute.xlu0 %268 }
  0xc6   : > { %v433_v4 = vsel %vm429_vm5, %v424_v18, %v271_v34  ;;  %v432_v5 = vsel %vm429_vm5, %v423_v19, %v269_v35 }
  0xc9   : > { %v275_v36 = vpop.permute.xlu1 %274  ;;  %v273_v37 = vpop.permute.xlu0 %272 }
  0xca   : > { %v435_v18 = vsel %vm429_vm5, %v806_v24, %v275_v36  ;;  %v434_v19 = vsel %vm429_vm5, %v809_v25, %v273_v37 }
  0xcd   : > { %v819_v38 = vpop.permute.xlu1 %278  ;;  %v821_v39 = vpop.permute.xlu0 %276 }
  0xce   : > { %v437_v34 = vsel %vm429_vm5, %v814_v30, %v819_v38  ;;  %v436_v35 = vsel %vm429_vm5, %v817_v31, %v821_v39 }
  0xd1   : > { %v291_v40 = vpop.permute.xlu1 %290  ;;  %v289_v41 = vpop.permute.xlu0 %288 }
  0xd2   : > { %v440_v0 = vsel %vm438_vm6, %v431_v62, %v291_v40  ;;  %v439_v1 = vsel %vm438_vm6, %v430_v63, %v289_v41 }
  0xd3   : > { %v449_v6 = vsel %vm447_vm7, %v440_v0, 1.0  ;;  %v448_v7 = vsel %vm447_vm7, %v439_v1, 1.0 }
  0xd5   : > { %v295_v42 = vpop.permute.xlu1 %294  ;;  %v293_v43 = vpop.permute.xlu0 %292 }
  0xd6   : > { %v442_v8 = vsel %vm438_vm6, %v433_v4, %v295_v42  ;;  %v441_v9 = vsel %vm438_vm6, %v432_v5, %v293_v43 }
  0xd7   : > { %v451_v20 = vsel %vm447_vm7, %v442_v8, 1.0  ;;  %v450_v21 = vsel %vm447_vm7, %v441_v9, 1.0 }
  0xd9   : > { %v299_v44 = vpop.permute.xlu1 %298  ;;  %v297_v45 = vpop.permute.xlu0 %296 }
  0xda   : > { %v444_v22 = vsel %vm438_vm6, %v435_v18, %v299_v44  ;;  %v443_v23 = vsel %vm438_vm6, %v434_v19, %v297_v45 }
  0xdb   : > { %v453_v36 = vsel %vm447_vm7, %v444_v22, 1.0  ;;  %v452_v37 = vsel %vm447_vm7, %v443_v23, 1.0 }
  0xdd   : > { %v823_v46 = vpop.permute.xlu1 %302  ;;  %v825_v47 = vpop.permute.xlu0 %300 }
  0xde   : > { %v446_v40 = vsel %vm438_vm6, %v437_v34, %v823_v46  ;;  %v445_v30 = vsel %vm438_vm6, %v436_v35, %v825_v47 }
  0xdf   : > { %v455_v46 = vsel %vm447_vm7, %v446_v40, 1.0  ;;  %v454_v47 = vsel %vm447_vm7, %v445_v30, 1.0 }
  0xe1   : > { %v315_v48 = vpop.permute.xlu1 %314  ;;  %v313_v49 = vpop.permute.xlu0 %312 }
  0xe2   : > { %v458_v10 = vsel %vm456_vm8, %v449_v6, %v315_v48  ;;  %v457_v11 = vsel %vm456_vm8, %v448_v7, %v313_v49 }
  0xe5   : > { %v319_v50 = vpop.permute.xlu1 %318  ;;  %v317_v51 = vpop.permute.xlu0 %316 }
  0xe6   : > { %v460_v26 = vsel %vm456_vm8, %v451_v20, %v319_v50  ;;  %v459_v24 = vsel %vm456_vm8, %v450_v21, %v317_v51 }
  0xe9   : > { %v827_v52 = vpop.permute.xlu1 %322  ;;  %v829_v53 = vpop.permute.xlu0 %320 }
  0xea   : > { %v462_v38 = vsel %vm456_vm8, %v453_v36, %v827_v52  ;;  %v461_v31 = vsel %vm456_vm8, %v452_v37, %v829_v53 }
  0xed   : > { %v831_v54 = vpop.permute.xlu1 %326  ;;  %v833_v55 = vpop.permute.xlu0 %324 }
  0xee   : > { %v464_v48 = vsel %vm456_vm8, %v455_v46, %v831_v54  ;;  %v463_v49 = vsel %vm456_vm8, %v454_v47, %v833_v55 }
  0xf1   : > { %v339_v56 = vpop.permute.xlu1 %338  ;;  %v337_v57 = vpop.permute.xlu0 %336 }
  0xf2   : > { %v467_v12 = vsel %vm465_vm9, %v458_v10, %v339_v56  ;;  %v466_v13 = vsel %vm465_vm9, %v457_v11, %v337_v57 }
  0xf5   : > { %v343_v58 = vpop.permute.xlu1 %342  ;;  %v341_v59 = vpop.permute.xlu0 %340 }
  0xf6   : > { %v469_v25 = vsel %vm465_vm9, %v460_v26, %v343_v58  ;;  %v468_v27 = vsel %vm465_vm9, %v459_v24, %v341_v59 }
  0xf9   : > { %v347_v60 = vpop.permute.xlu1 %346  ;;  %v345_v61 = vpop.permute.xlu0 %344 }
  0xfa   : > { %v471_v39 = vsel %vm465_vm9, %v462_v38, %v347_v60  ;;  %v470_v41 = vsel %vm465_vm9, %v461_v31, %v345_v61 }
  0xfd   : > { %v351_v2 = vpop.permute.xlu1 %350  ;;  %v349_v3 = vpop.permute.xlu0 %348 }
  0xfe   : > { %v473_v50 = vsel %vm465_vm9, %v464_v48, %v351_v2  ;;  %v472_v51 = vsel %vm465_vm9, %v463_v49, %v349_v3 }
 0x101   : > { %v363_v14 = vpop.permute.xlu1 %362  ;;  %v361_v15 = vpop.permute.xlu0 %360 }
 0x102   : > { %v476_v16 = vsel %vm474_vm10, %v467_v12, %v363_v14  ;;  %v475_v17 = vsel %vm474_vm10, %v466_v13, %v361_v15 }
 0x103   : > { %485 = vst.msk [vmem:[%s852_s24 + $0x8] sm:$0xff] %vm483_vm11, %v476_v16  ;;  %484 = vst.msk [vmem:[%s852_s24] sm:$0xff] %vm483_vm11, %v475_v17 }
 0x105   : > { %v367_v28 = vpop.permute.xlu1 %366  ;;  %v365_v29 = vpop.permute.xlu0 %364 }
 0x106   : > { %v478_v32 = vsel %vm474_vm10, %v469_v25, %v367_v28  ;;  %v477_v33 = vsel %vm474_vm10, %v468_v27, %v365_v29 }
 0x107   : > { %487 = vst.msk [vmem:[%s852_s24 + $0x18] sm:$0xff] %vm483_vm11, %v478_v32  ;;  %486 = vst.msk [vmem:[%s852_s24 + $0x10] sm:$0xff] %vm483_vm11, %v477_v33 }
 0x109   : > { %v371_v42 = vpop.permute.xlu1 %370  ;;  %v369_v43 = vpop.permute.xlu0 %368 }
 0x10a   : > { %v480_v44 = vsel %vm474_vm10, %v471_v39, %v371_v42  ;;  %v479_v45 = vsel %vm474_vm10, %v470_v41, %v369_v43 }
 0x10b   : > { %489 = vst.msk [vmem:[%s852_s24 + $0x28] sm:$0xff] %vm483_vm11, %v480_v44  ;;  %488 = vst.msk [vmem:[%s852_s24 + $0x20] sm:$0xff] %vm483_vm11, %v479_v45 }
 0x10d   : > { %v375_v52 = vpop.permute.xlu1 %374  ;;  %v373_v53 = vpop.permute.xlu0 %372 }
 0x10e   : > { %v482_v56 = vsel %vm474_vm10, %v473_v50, %v375_v52  ;;  %v481_v57 = vsel %vm474_vm10, %v472_v51, %v373_v53 }
 0x10f   : > { %491 = vst.msk [vmem:[%s852_s24 + $0x38] sm:$0xff] %vm483_vm11, %v482_v56  ;;  %490 = vst.msk [vmem:[%s852_s24 + $0x30] sm:$0xff] %vm483_vm11, %v481_v57 }
 0x110 PF: > { %s11_s6 = sadd.s32 1, %s582_s6  }
 0x111   : > { %p8_p4 = scmp.ge.s32.totalorder %s11_s6, 4  }
 0x113   :  { %10 = sbr.rel (!%p8_p4) target bundleno = 1 (0x1), region = 54 }

</bundles_post_ra>
